<compile_context>
chip_gen: v6e
topology: v6e:2x2x1
jax: 0.10.0
libtpu: 0.0.40
codegen_flags: <defaults>
</compile_context>

<pallas_src>
import functools
import numpy as np

import jax
import jax.numpy as jnp
from jax.experimental import pallas as pl
from jax.experimental.pallas import tpu as pltpu


# --------------------------------------------------------------------------------------
# Pallas kernels
# --------------------------------------------------------------------------------------

def _enc_kernel(x_ref, w_ref, b_ref, o_ref):
    # x: [M, Cin], w: [Cin, 2C], b: [1, 2C] -> relu(x @ w + b)   (both levels fused)
    y = jnp.dot(x_ref[...], w_ref[...], preferred_element_type=jnp.float32) + b_ref[...]
    o_ref[...] = jnp.maximum(y, 0.0)


def _masked_pool_kernel(fts_ref, mask_ref, o_ref):
    # fts: [C, HW], mask: [1, HW] -> [1, C]  (masked average pooling, MXU contraction)
    f = fts_ref[...]
    m = mask_ref[...]
    s = jax.lax.dot_general(m, f, (((1,), (1,)), ((), ())),
                            preferred_element_type=jnp.float32)            # [1, C]
    o_ref[...] = s / (jnp.sum(m) + 1e-5)


def _pred_pool_kernel(fts_ref, proto_ref, sc_ref, pred_ref, pool_ref, *, scaler):
    # Fused getPred + getFeatures (coarse query prototype).  One grid step per image.
    # fts: [1, C, HW]; proto: [1, C]; sc: [1, 2] = (thresh, ||proto||)
    f = fts_ref[0]                                                          # [C, HW]
    p = proto_ref[...]                                                      # [1, C]
    sc = sc_ref[...]                                                        # [1, 2]
    thresh = sc[:, 0:1]                                                     # [1, 1]
    pn = sc[:, 1:2]                                                         # [1, 1]
    num = jnp.dot(p, f, preferred_element_type=jnp.float32)                 # [1, HW] (MXU)
    fn = jnp.sqrt(jnp.sum(f * f, axis=0, keepdims=True))                    # [1, HW]
    denom = jnp.maximum(fn * pn, 1e-8)
    cos = num * pl.reciprocal(denom, approx=True)                           # cosine_similarity
    sim = -cos * scaler
    pred = 1.0 - jax.nn.sigmoid(0.5 * (sim - thresh))                       # [1, HW]
    pred_ref[0] = pred
    pooled = jax.lax.dot_general(pred, f, (((1,), (1,)), ((), ())),
                                 preferred_element_type=jnp.float32)        # [1, C] (MXU)
    pool_ref[0] = pooled / (jnp.sum(pred) + 1e-5)


def _bate_kernel(P_ref, q_ref, wqkv_ref, wfc_ref, lng_ref, lnb_ref,
                 w1_ref, b1_ref, w2_ref, b2_ref, t_ref, tmean_ref,
                 *, n_head, d_k, d_v, inv_temp):
    # Fused BATE: gate + MHA (fused QKV, heads unrolled) + residual + LN + MLP + mean.
    P = P_ref[...]                                                          # [k, C]
    q = q_ref[...]                                                          # [1, C]
    # ----- gate: A = P @ q^T, threshold, softmax over k, X = A @ q -----
    A = jax.lax.dot_general(P, q, (((1,), (1,)), ((), ())),
                            preferred_element_type=jnp.float32)             # [k, 1]
    kc = jnp.floor((jnp.min(A) + jnp.mean(A)) * 0.5)
    A = A + jnp.where(A < kc, -10000.0, 0.0)
    A = jax.nn.softmax(A, axis=0)
    X = A * q                                                               # [k, C]
    residual = X
    # ----- MHA with one fused QKV projection -----
    qkv = jnp.dot(X, wqkv_ref[...], preferred_element_type=jnp.float32)     # [k, 3*nh*dk]
    heads = []
    for h in range(n_head):
        qh = qkv[:, h * d_k:(h + 1) * d_k]
        kh = qkv[:, (n_head + h) * d_k:(n_head + h + 1) * d_k]
        vh = qkv[:, (2 * n_head + h) * d_v:(2 * n_head + h + 1) * d_v]
        s = jax.lax.dot_general(qh, kh, (((1,), (1,)), ((), ())),
                                preferred_element_type=jnp.float32) * inv_temp
        a = jax.nn.softmax(s, axis=-1)
        heads.append(jnp.dot(a, vh, preferred_element_type=jnp.float32))
    attn = jnp.concatenate(heads, axis=-1)                                  # [k, nh*dv]
    out = jnp.dot(attn, wfc_ref[...], preferred_element_type=jnp.float32) + residual
    # ----- layer norm -----
    mu = jnp.mean(out, axis=-1, keepdims=True)
    var = jnp.mean((out - mu) ** 2, axis=-1, keepdims=True)
    out = (out - mu) * jax.lax.rsqrt(var + 1e-6) * lng_ref[...] + lnb_ref[...]
    # ----- MLP (Linear-GELU-Linear) -----
    h1 = jnp.dot(out, w1_ref[...], preferred_element_type=jnp.float32) + b1_ref[...]
    h1 = jax.nn.gelu(h1, approximate=True)
    out = jnp.dot(h1, w2_ref[...], preferred_element_type=jnp.float32) + b2_ref[...]
    t_ref[...] = out                                                        # [k, C]
    tmean_ref[...] = jnp.mean(out, axis=0, keepdims=True)                   # [1, C]


# --------------------------------------------------------------------------------------
# Host-side (data-dependent) farthest-point prototype partitioning — single host pass
# --------------------------------------------------------------------------------------

def compute_multiple_prototypes_np(fg_num, sup_fts, sup_fg, sampler):
    """sup_fts: [B, C, h, w]; sup_fg: [B, h, w] -> np.ndarray [B, fg_num, C]."""
    sup_fts = np.asarray(sup_fts, dtype=np.float32)
    sup_fg = np.asarray(sup_fg, dtype=np.float32)
    B, C, h, w = sup_fts.shape
    fg_mask = sup_fg != 0                       # bilinear resize is identity here; .bool()
    batch_fg_protos = []
    for b in range(B):
        fg_mask_i = fg_mask[b].copy()
        if fg_mask_i.sum() < fg_num:
            fm = fg_mask_i.reshape(-1)
            fm[:fg_num] = True
            fg_mask_i = fm.reshape(h, w)
        pts = np.stack(np.nonzero(fg_mask_i), axis=1)                       # [P, 2]
        all_centers = []
        first = True
        for _ in range(fg_num):
            if first:
                i = sampler.choice(pts.shape[0])
                first = False
            else:
                dist = pts.reshape(-1, 1, 2) - np.stack(all_centers, 0).reshape(1, -1, 2)
                i = int(np.argmax((dist ** 2).sum(-1).min(1)))
            all_centers.append(pts[i])
        dist = pts.reshape(-1, 1, 2) - np.stack(all_centers, 0).reshape(1, -1, 2)
        fg_labels = np.argmin((dist ** 2).sum(-1), axis=1)
        fg_feats = np.transpose(sup_fts[b], (1, 2, 0))[fg_mask_i]           # [P, C]
        fg_protos = [fg_feats[fg_labels == i].mean(0) for i in range(fg_num)]
        fg_protos = np.stack(fg_protos, axis=1)                             # [C, fg_num]
        batch_fg_protos.append(fg_protos)
    return np.stack(batch_fg_protos, 0).transpose(0, 2, 1)                  # [B, fg_num, C]


# --------------------------------------------------------------------------------------
# Model
# --------------------------------------------------------------------------------------

class FewShotSegPallas:
    def __init__(self, key, C=32, mlp_dim=64, n_head=3):
        self.C = C
        self.mlp_dim = mlp_dim
        self.n_head = n_head
        self.d_k = C
        self.d_v = C
        self.scaler = 20.0
        self.fg_num = 10
        self.fg_sampler = np.random.RandomState(1289)
        self.n_iter = 3

        ks = jax.random.split(key, 8)
        s = 0.1
        p = {}
        p["enc_w"] = s * jax.random.normal(ks[0], (3, 2 * C), jnp.float32)       # both levels
        p["enc_b"] = jnp.zeros((1, 2 * C), jnp.float32)
        p["w_qkv"] = s * jax.random.normal(ks[1], (C, 3 * n_head * self.d_k), jnp.float32)
        p["w_fc"] = s * jax.random.normal(ks[2], (n_head * self.d_v, C), jnp.float32)
        p["ln_g"] = jnp.ones((1, C), jnp.float32)
        p["ln_b"] = jnp.zeros((1, C), jnp.float32)
        p["mlp_w1"] = s * jax.random.normal(ks[3], (C, mlp_dim), jnp.float32)
        p["mlp_b1"] = jnp.zeros((1, mlp_dim), jnp.float32)
        p["mlp_w2"] = s * jax.random.normal(ks[4], (mlp_dim, C), jnp.float32)
        p["mlp_b2"] = jnp.zeros((1, C), jnp.float32)
        p["alpha"] = jnp.array([1.0, 0.0], jnp.float32)
        self.params = p

        self._encode_jit = jax.jit(self._encode_impl)
        self._forward_jit = jax.jit(self._forward_device_impl)

    # ------------------------- encoder stub (fused 1x1 conv) --------------------------
    def _encode_impl(self, params, imgs):
        N, Cin, H, W = imgs.shape
        x = jnp.transpose(imgs, (0, 2, 3, 1)).reshape(N * H * W, Cin).astype(jnp.float32)
        y = pl.pallas_call(
            _enc_kernel,
            out_shape=jax.ShapeDtypeStruct((N * H * W, 2 * self.C), jnp.float32),
        )(x, params["enc_w"], params["enc_b"])
        y = y.reshape(N, H, W, 2 * self.C)
        f0 = jnp.transpose(y[..., :self.C], (0, 3, 1, 2))                    # [N, C, H, W]
        f1 = jnp.transpose(y[..., self.C:], (0, 3, 1, 2))
        tao = 0.1 * jnp.mean(f0, axis=(1, 2, 3))                             # [N]
        return (f0, f1), tao

    # ---------------------------------- primitives ------------------------------------
    def _get_features(self, fts, mask):
        # fts: [1, C, H, W]; mask: [1, H, W] -> [1, C]
        _, C, H, W = fts.shape
        fts2 = fts.reshape(C, H * W).astype(jnp.float32)
        m2 = mask.reshape(1, H * W).astype(jnp.float32)
        return pl.pallas_call(
            _masked_pool_kernel,
            out_shape=jax.ShapeDtypeStruct((1, C), jnp.float32),
        )(fts2, m2)

    @staticmethod
    def _get_prototype(fg_fts):
        n_shots = len(fg_fts[0])
        return [jnp.sum(jnp.concatenate(way, axis=0), axis=0, keepdims=True) / n_shots
                for way in fg_fts]

    def _pred_and_pool(self, fts, prototype, thresh):
        # fts: [N, C, H, W]; prototype: [1, C]; thresh: size-1 array (qry_bs == 1)
        N, C, H, W = fts.shape
        HW = H * W
        fts2 = fts.reshape(N, C, HW).astype(jnp.float32)
        proto = jnp.reshape(prototype, (1, C)).astype(jnp.float32)
        pn = jnp.sqrt(jnp.sum(proto * proto))          # hoisted out of the kernel
        sc = jnp.stack([jnp.reshape(jnp.asarray(thresh, jnp.float32), ()), pn]).reshape(1, 2)
        pred, pool = pl.pallas_call(
            functools.partial(_pred_pool_kernel, scaler=self.scaler),
            grid=(N,),
            in_specs=[pl.BlockSpec((1, C, HW), lambda i: (i, 0, 0)),
                      pl.BlockSpec((1, C), lambda i: (0, 0)),
                      pl.BlockSpec((1, 2), lambda i: (0, 0))],
            out_specs=(pl.BlockSpec((1, 1, HW), lambda i: (i, 0, 0)),
                       pl.BlockSpec((1, 1, C), lambda i: (i, 0, 0))),
            out_shape=(jax.ShapeDtypeStruct((N, 1, HW), jnp.float32),
                       jax.ShapeDtypeStruct((N, 1, C), jnp.float32)),
            compiler_params=pltpu.CompilerParams(dimension_semantics=("parallel",)),
        )(fts2, proto, sc)
        return pred, pool                               # [N, 1, HW], [N, 1, C]

    def _bate(self, params, P, q):
        # P: [k, C]; q: [1, C] -> (T [k, C], mean_k(T) [1, C]) in one fused kernel
        k, C = P.shape
        T, T_mean = pl.pallas_call(
            functools.partial(_bate_kernel, n_head=self.n_head, d_k=self.d_k,
                              d_v=self.d_v, inv_temp=1.0 / (float(self.d_k) ** 0.5)),
            out_shape=(jax.ShapeDtypeStruct((k, C), jnp.float32),
                       jax.ShapeDtypeStruct((1, C), jnp.float32)),
        )(P.astype(jnp.float32), q.astype(jnp.float32),
          params["w_qkv"], params["w_fc"], params["ln_g"], params["ln_b"],
          params["mlp_w1"], params["mlp_b1"], params["mlp_w2"], params["mlp_b2"])
        return T, T_mean

    # ------------------------------ jitted device forward -----------------------------
    def _forward_device_impl(self, params, supp_fts, qry_fts, tao_q, supp_mask, fg_parts):
        # supp_fts: tuple of [supp_bs, n_ways, n_shots, C, H, W]
        # qry_fts:  tuple of [qry_bs, n_queries, C, H, W]
        # fg_parts: tuple of [supp_bs, n_ways, n_shots, fg_num, C]
        n_lvl = len(supp_fts)
        supp_bs, n_ways, n_shots = supp_fts[0].shape[:3]
        qry_bs, n_queries, C, H, W = qry_fts[0].shape
        thresh = tao_q                   # shape [qry_bs]; qry_bs == 1
        way = 0                          # n_ways == 1 (asserted in forward)

        outputs = []
        for epi in range(supp_bs):
            # masked-average-pooled support features -> coarse fg prototypes
            supp_pooled = [[[self._get_features(supp_fts[n][epi:epi + 1, w_, shot],
                                                supp_mask[epi:epi + 1, w_, shot])
                             for shot in range(n_shots)] for w_ in range(n_ways)]
                           for n in range(n_lvl)]
            fg_prototypes = [self._get_prototype(supp_pooled[n]) for n in range(n_lvl)]

            # initial coarse query prototype (fused cosine-pred + masked pool)
            qry_proto_coarse = []
            for n in range(n_lvl):
                _, pool = self._pred_and_pool(qry_fts[n][epi], fg_prototypes[n][way], thresh)
                qry_proto_coarse.append(pool[0])                             # [1, C]

            # BATE refinement iterations
            fg_part = [[[fg_parts[n][epi, w_, shot] for shot in range(n_shots)]
                        for w_ in range(n_ways)] for n in range(n_lvl)]
            supp_proto = None
            for _ in range(self.n_iter):
                supp_proto = [[[None] * n_shots for _ in range(n_ways)] for _ in range(n_lvl)]
                for n in range(n_lvl):
                    for w_ in range(n_ways):
                        for shot in range(n_shots):
                            T, T_mean = self._bate(params, fg_part[n][w_][shot],
                                                   qry_proto_coarse[n])
                            fg_part[n][w_][shot] = T                         # [k, C]
                            supp_proto[n][w_][shot] = T_mean                 # [1, C]
                qry_proto_coarse = []
                for n in range(n_lvl):
                    # NOTE: [epi] shot-indexing reproduces the reference quirk
                    # (valid for supp_bs == 1 / n_shots == 1).
                    _, pool = self._pred_and_pool(qry_fts[n][epi],
                                                  supp_proto[n][way][epi], thresh)
                    qry_proto_coarse.append(pool[0])

            # final prediction, kept lane-dense as [n_queries, n_ways, H*W]
            preds_lvl = [self._pred_and_pool(qry_fts[n][epi],
                                             supp_proto[n][way][epi], thresh)[0]
                         for n in range(n_lvl)]
            # TODO(synk): bilinear upsample to img_size is the identity (feature res == image res)
            pred = jnp.stack([params["alpha"][n] * preds_lvl[n] for n in range(n_lvl)], axis=0)
            preds = jnp.sum(pred, axis=0) / jnp.sum(params["alpha"])         # [n_queries, 1, HW]
            preds = jnp.concatenate([1.0 - preds, preds], axis=1)            # [n_queries, 2, HW]
            outputs.append(preds.reshape(n_queries, 2, H, W))

        output = jnp.stack(outputs, axis=1)            # [n_queries, supp_bs, 2, H, W]
        return output.reshape(-1, 2, H, W)

    # ----------------------------------- forward --------------------------------------
    def forward(self, supp_imgs, supp_mask, qry_imgs):
        n_ways = len(supp_imgs)
        n_shots = len(supp_imgs[0])
        n_queries = len(qry_imgs)
        assert n_ways == 1 and n_queries == 1
        qry_bs = qry_imgs[0].shape[0]
        supp_bs = supp_imgs[0][0].shape[0]
        img_size = supp_imgs[0][0].shape[-2:]

        supp_mask_arr = jnp.stack([jnp.stack(way, axis=0) for way in supp_mask], axis=0)
        supp_mask_arr = supp_mask_arr.reshape(supp_bs, n_ways, n_shots, *img_size)
        imgs_concat = jnp.concatenate(
            [jnp.concatenate(way, axis=0) for way in supp_imgs]
            + [jnp.concatenate(qry_imgs, axis=0)], axis=0)

        # ---- device region 1: backbone stub (one fused Pallas matmul, jitted) ----
        feats, tao = self._encode_jit(self.params, imgs_concat)
        n_supp = n_ways * n_shots * supp_bs
        supp_fts = tuple(f[:n_supp].reshape(supp_bs, n_ways, n_shots, -1,
                                            f.shape[-2], f.shape[-1]) for f in feats)
        qry_fts = tuple(f[n_supp:].reshape(qry_bs, n_queries, -1,
                                           f.shape[-2], f.shape[-1]) for f in feats)
        tao_q = tao[n_supp:]

        # ---- single host step (one device->host sync): data-dependent FPS partitions ----
        # Sampler call order (epi -> level -> way -> shot) matches the reference exactly.
        supp_fts_np = [np.asarray(f) for f in supp_fts]
        mask_np = np.asarray(supp_mask_arr)
        n_lvl = len(supp_fts)
        fg_parts_np = [np.zeros((supp_bs, n_ways, n_shots, self.fg_num,
                                 supp_fts_np[n].shape[3]), np.float32)
                       for n in range(n_lvl)]
        for epi in range(supp_bs):
            for n in range(n_lvl):
                for way in range(n_ways):
                    for shot in range(n_shots):
                        proto = compute_multiple_prototypes_np(
                            self.fg_num, supp_fts_np[n][epi:epi + 1, way, shot],
                            mask_np[epi:epi + 1, way, shot], self.fg_sampler)
                        fg_parts_np[n][epi, way, shot] = proto[0]
        fg_parts = tuple(jnp.asarray(a) for a in fg_parts_np)

        # ---- device region 2: whole episode loop under one jit ----
        return self._forward_jit(self.params, supp_fts, qry_fts, tao_q,
                                 supp_mask_arr, fg_parts)


# --------------------------------------------------------------------------------------
# Main
# --------------------------------------------------------------------------------------

if __name__ == "__main__":
    key = jax.random.PRNGKey(0)
    k_model, k_supp, k_qry = jax.random.split(key, 3)

    H = W = 16
    supp_img = jax.random.normal(k_supp, (1, 3, H, W), jnp.float32)   # B=1, NCHW
    qry_img = jax.random.normal(k_qry, (1, 3, H, W), jnp.float32)

    mask = np.zeros((1, H, W), dtype=np.float32)
    mask[:, 4:12, 4:12] = 1.0                                         # 64 fg pixels (>= fg_num)
    supp_mask = jnp.asarray(mask)

    supp_imgs = [[supp_img]]        # way x shot x [B, 3, H, W]
    supp_masks = [[supp_mask]]      # way x shot x [B, H, W]
    qry_imgs = [qry_img]            # N x [B, 3, H, W]

    model = FewShotSegPallas(k_model, C=32, mlp_dim=64, n_head=3)
    out = model.forward(supp_imgs, supp_masks, qry_imgs)
    out = jax.block_until_ready(out)

    assert out.shape == (1, 2, H, W), out.shape
    assert bool(jnp.all(jnp.isfinite(out)))
    print("KERNEL_OK")
</pallas_src>

<mosaic_0001>
module attributes {stable_mosaic.version = 11 : i64} {
  func.func @_enc_kernel(%arg0: memref<512x3xf32, #tpu.memory_space<vmem>>, %arg1: memref<3x64xf32, #tpu.memory_space<vmem>>, %arg2: memref<1x64xf32, #tpu.memory_space<vmem>>, %arg3: memref<512x64xf32, #tpu.memory_space<vmem>>) attributes {dimension_semantics = [], scalar_prefetch = 0 : i64, scratch_operands = 0 : i64, tpu.core_type = #tpu.core_type<tc>} {
    %c0 = arith.constant 0 : index
    %c0_0 = arith.constant 0 : index
    %0 = vector.load %arg0[%c0, %c0_0] : memref<512x3xf32, #tpu.memory_space<vmem>>, vector<512x3xf32>
    %c0_1 = arith.constant 0 : index
    %c0_2 = arith.constant 0 : index
    %1 = vector.load %arg1[%c0_1, %c0_2] : memref<3x64xf32, #tpu.memory_space<vmem>>, vector<3x64xf32>
    %cst = arith.constant dense<0.000000e+00> : vector<512x64xf32>
    %2 = tpu.matmul %0, %1, %cst {dimension_numbers = #tpu.dot_dimension_numbers<[1], [0], [0], [1], [0, 0, 1, 1], [], []>} : vector<512x3xf32>, vector<3x64xf32>, vector<512x64xf32> -> vector<512x64xf32>
    %c0_3 = arith.constant 0 : index
    %c0_4 = arith.constant 0 : index
    %3 = vector.load %arg2[%c0_3, %c0_4] : memref<1x64xf32, #tpu.memory_space<vmem>>, vector<1x64xf32>
    %4 = vector.broadcast %3 : vector<1x64xf32> to vector<512x64xf32>
    %5 = arith.addf %2, %4 : vector<512x64xf32>
    %cst_5 = arith.constant 0.000000e+00 : f32
    %6 = vector.broadcast %cst_5 : f32 to vector<512x64xf32>
    %7 = arith.maximumf %5, %6 : vector<512x64xf32>
    %c0_6 = arith.constant 0 : index
    %c0_7 = arith.constant 0 : index
    %8 = vector.load %arg3[%c0_6, %c0_7] : memref<512x64xf32, #tpu.memory_space<vmem>>, vector<512x64xf32>
    tpu.vector_store %arg3[%c0_6, %c0_7], %7 {strides = array<i32>} : memref<512x64xf32, #tpu.memory_space<vmem>>, vector<512x64xf32>,
    return
  }
}

</mosaic_0001>

<bundles_post_ra>
// kernel: _encode_impl.1
= control target key start
LH: loop header
LB: loop body
LE: loop exit
PB: predicated region body
PF: predicated region fallthrough
CT: control target
= control target key end

     0   :  { %vm279_vm0 = vcmask 1042432   ;;  %vm86_vm1 = vcmask 23552   ;;  %vm732_vm2 = vcmask 523264   ;;  %s1636_s1 = inlined_call_operand.vmem [shape: f32[3,64], index: 1, kind: input, shape index: {}]   ;;  %s1637_s0 = inlined_call_operand.vmem [shape: f32[512,3], index: 0, kind: input, shape index: {}]   ;;  %s1638_s2 = inlined_call_operand.vmem [shape: f32[1,64], index: 2, kind: input, shape index: {}]   ;;  %s1639_s3 = inlined_call_operand.vmem [shape: f32[512,64], index: 3, kind: output, shape index: {}]  }
   0x1   :  { %v78_v0 = vld [vmem:[%s1636_s1] sm:$0x7]  ;;  %v15_v3 = vld [vmem:[%s1637_s0 + $0x8] sm:$0xff]  ;;  %v16_v5 = vld [vmem:[%s1637_s0 + $0x10] sm:$0xff] }
   0x2   :  { %v14_v1 = vld [vmem:[%s1637_s0] sm:$0xff]  ;;  %932 = vmatprep.subr.msk.mxu0 %vm279_vm0, %v78_v0  ;;  %1030 = vmatprep.subr.msk.mxu1 %vm279_vm0, %v78_v0  ;;  %v47_v4 = vld [vmem:[%s1637_s0 + $0x108] sm:$0xff]  ;;  %v48_v6 = vld [vmem:[%s1637_s0 + $0x110] sm:$0xff] }
   0x3   :  { %v46_v2 = vld [vmem:[%s1637_s0 + $0x100] sm:$0xff]  ;;  %933 = vmatpush3.msk.msra.mxu0 %vm279_vm0, %v78_v0  ;;  %1031 = vmatpush3.msk.msra.mxu1 %vm279_vm0, %v78_v0  ;;  %v17_v7 = vld [vmem:[%s1637_s0 + $0x18] sm:$0xff]  ;;  %v19_v11 = vld [vmem:[%s1637_s0 + $0x28] sm:$0xff] }
   0x4   :  { %934 = vmatprep.mubr.msk.f32.mxu0 %vm86_vm1, %v14_v1  ;;  %982 = vmatprep.mubr.msk.f32.mxu1 %vm86_vm1, %v46_v2  ;;  %v49_v8 = vld [vmem:[%s1637_s0 + $0x118] sm:$0xff]  ;;  %v18_v9 = vld [vmem:[%s1637_s0 + $0x20] sm:$0xff]  ;;  %v51_v12 = vld [vmem:[%s1637_s0 + $0x128] sm:$0xff] }
   0x5   :  { %935 = vmatmul.mubr.msk.f32.vlgmr.msra.gmra.mxu0 %vm86_vm1, %v15_v3  ;;  %983 = vmatmul.mubr.msk.f32.vlgmr.msra.gmra.mxu1 %vm86_vm1, %v47_v4  ;;  %v50_v10 = vld [vmem:[%s1637_s0 + $0x120] sm:$0xff]  ;;  %v20_v13 = vld [vmem:[%s1637_s0 + $0x30] sm:$0xff]  ;;  %v21_v15 = vld [vmem:[%s1637_s0 + $0x38] sm:$0xff] }
   0x6   :  { %937 = vmatprep.mubr.msk.f32.mxu0 %vm86_vm1, %v16_v5  ;;  %985 = vmatprep.mubr.msk.f32.mxu1 %vm86_vm1, %v48_v6  ;;  %v52_v14 = vld [vmem:[%s1637_s0 + $0x130] sm:$0xff]  ;;  %v53_v16 = vld [vmem:[%s1637_s0 + $0x138] sm:$0xff]  ;;  %v22_v17 = vld [vmem:[%s1637_s0 + $0x40] sm:$0xff] }
   0x7   :  { %v54_v18 = vld [vmem:[%s1637_s0 + $0x140] sm:$0xff]  ;;  %v23_v19 = vld [vmem:[%s1637_s0 + $0x48] sm:$0xff]  ;;  %v24_v21 = vld [vmem:[%s1637_s0 + $0x50] sm:$0xff] }
   0x8   :  { %v55_v20 = vld [vmem:[%s1637_s0 + $0x148] sm:$0xff]  ;;  %v56_v22 = vld [vmem:[%s1637_s0 + $0x150] sm:$0xff]  ;;  %v25_v23 = vld [vmem:[%s1637_s0 + $0x58] sm:$0xff] }
   0x9   :  { %938 = vmatmul.mubr.msk.f32.gmra.mxu0 %vm86_vm1, %v17_v7  ;;  %986 = vmatmul.mubr.msk.f32.gmra.mxu1 %vm86_vm1, %v49_v8  ;;  %v57_v24 = vld [vmem:[%s1637_s0 + $0x158] sm:$0xff]  ;;  %v26_v25 = vld [vmem:[%s1637_s0 + $0x60] sm:$0xff]  ;;  %v27_v27 = vld [vmem:[%s1637_s0 + $0x68] sm:$0xff] }
   0xa   :  { %940 = vmatprep.mubr.msk.f32.mxu0 %vm86_vm1, %v18_v9  ;;  %988 = vmatprep.mubr.msk.f32.mxu1 %vm86_vm1, %v50_v10  ;;  %v58_v26 = vld [vmem:[%s1637_s0 + $0x160] sm:$0xff]  ;;  %v59_v28 = vld [vmem:[%s1637_s0 + $0x168] sm:$0xff]  ;;  %v28_v29 = vld [vmem:[%s1637_s0 + $0x70] sm:$0xff] }
   0xb   :  { %v60_v30 = vld [vmem:[%s1637_s0 + $0x170] sm:$0xff]  ;;  %v29_v31 = vld [vmem:[%s1637_s0 + $0x78] sm:$0xff]  ;;  %v30_v33 = vld [vmem:[%s1637_s0 + $0x80] sm:$0xff] }
   0xc   :  { %v61_v32 = vld [vmem:[%s1637_s0 + $0x178] sm:$0xff]  ;;  %v62_v34 = vld [vmem:[%s1637_s0 + $0x180] sm:$0xff]  ;;  %v31_v35 = vld [vmem:[%s1637_s0 + $0x88] sm:$0xff] }
   0xd   :  { %941 = vmatmul.mubr.msk.f32.gmra.mxu0 %vm86_vm1, %v19_v11  ;;  %989 = vmatmul.mubr.msk.f32.gmra.mxu1 %vm86_vm1, %v51_v12  ;;  %v63_v36 = vld [vmem:[%s1637_s0 + $0x188] sm:$0xff]  ;;  %v32_v37 = vld [vmem:[%s1637_s0 + $0x90] sm:$0xff]  ;;  %v33_v39 = vld [vmem:[%s1637_s0 + $0x98] sm:$0xff] }
   0xe   :  { %943 = vmatprep.mubr.msk.f32.mxu0 %vm86_vm1, %v20_v13  ;;  %991 = vmatprep.mubr.msk.f32.mxu1 %vm86_vm1, %v52_v14  ;;  %v64_v38 = vld [vmem:[%s1637_s0 + $0x190] sm:$0xff]  ;;  %v65_v40 = vld [vmem:[%s1637_s0 + $0x198] sm:$0xff]  ;;  %v34_v41 = vld [vmem:[%s1637_s0 + $0xa0] sm:$0xff] }
   0xf   :  { %v66_v42 = vld [vmem:[%s1637_s0 + $0x1a0] sm:$0xff]  ;;  %v35_v43 = vld [vmem:[%s1637_s0 + $0xa8] sm:$0xff]  ;;  %v36_v45 = vld [vmem:[%s1637_s0 + $0xb0] sm:$0xff] }
  0x10   :  { %v67_v44 = vld [vmem:[%s1637_s0 + $0x1a8] sm:$0xff]  ;;  %v68_v46 = vld [vmem:[%s1637_s0 + $0x1b0] sm:$0xff]  ;;  %v37_v47 = vld [vmem:[%s1637_s0 + $0xb8] sm:$0xff] }
  0x11   :  { %944 = vmatmul.mubr.msk.f32.gmra.mxu0 %vm86_vm1, %v21_v15  ;;  %992 = vmatmul.mubr.msk.f32.gmra.mxu1 %vm86_vm1, %v53_v16  ;;  %v69_v48 = vld [vmem:[%s1637_s0 + $0x1b8] sm:$0xff]  ;;  %v38_v49 = vld [vmem:[%s1637_s0 + $0xc0] sm:$0xff]  ;;  %v39_v51 = vld [vmem:[%s1637_s0 + $0xc8] sm:$0xff] }
  0x12   :  { %946 = vmatprep.mubr.msk.f32.mxu0 %vm86_vm1, %v22_v17  ;;  %994 = vmatprep.mubr.msk.f32.mxu1 %vm86_vm1, %v54_v18  ;;  %v70_v50 = vld [vmem:[%s1637_s0 + $0x1c0] sm:$0xff]  ;;  %v71_v52 = vld [vmem:[%s1637_s0 + $0x1c8] sm:$0xff]  ;;  %v40_v53 = vld [vmem:[%s1637_s0 + $0xd0] sm:$0xff] }
  0x13   :  { %v72_v54 = vld [vmem:[%s1637_s0 + $0x1d0] sm:$0xff]  ;;  %v41_v55 = vld [vmem:[%s1637_s0 + $0xd8] sm:$0xff]  ;;  %v42_v57 = vld [vmem:[%s1637_s0 + $0xe0] sm:$0xff] }
  0x14   :  { %v73_v56 = vld [vmem:[%s1637_s0 + $0x1d8] sm:$0xff]  ;;  %v74_v58 = vld [vmem:[%s1637_s0 + $0x1e0] sm:$0xff]  ;;  %v43_v59 = vld [vmem:[%s1637_s0 + $0xe8] sm:$0xff] }
  0x15   :  { %947 = vmatmul.mubr.msk.f32.gmra.mxu0 %vm86_vm1, %v23_v19  ;;  %995 = vmatmul.mubr.msk.f32.gmra.mxu1 %vm86_vm1, %v55_v20  ;;  %v75_v60 = vld [vmem:[%s1637_s0 + $0x1e8] sm:$0xff]  ;;  %v44_v61 = vld [vmem:[%s1637_s0 + $0xf0] sm:$0xff]  ;;  %v45_v63 = vld [vmem:[%s1637_s0 + $0xf8] sm:$0xff] }
  0x16   :  { %949 = vmatprep.mubr.msk.f32.mxu0 %vm86_vm1, %v24_v21  ;;  %997 = vmatprep.mubr.msk.f32.mxu1 %vm86_vm1, %v56_v22  ;;  %v76_v62 = vld [vmem:[%s1637_s0 + $0x1f0] sm:$0xff]  ;;  %v77_v0 = vld [vmem:[%s1637_s0 + $0x1f8] sm:$0xff]  ;;  %v1314_v1 = vld [vmem:[%s1638_s2] ss:$0 sm:$0xff] }
  0x19   :  { %950 = vmatmul.mubr.msk.f32.gmra.mxu0 %vm86_vm1, %v25_v23  ;;  %998 = vmatmul.mubr.msk.f32.gmra.mxu1 %vm86_vm1, %v57_v24 }
  0x1a   :  { %952 = vmatprep.mubr.msk.f32.mxu0 %vm86_vm1, %v26_v25  ;;  %1000 = vmatprep.mubr.msk.f32.mxu1 %vm86_vm1, %v58_v26 }
  0x1d   :  { %953 = vmatmul.mubr.msk.f32.gmra.mxu0 %vm86_vm1, %v27_v27  ;;  %1001 = vmatmul.mubr.msk.f32.gmra.mxu1 %vm86_vm1, %v59_v28 }
  0x1e   :  { %955 = vmatprep.mubr.msk.f32.mxu0 %vm86_vm1, %v28_v29  ;;  %1003 = vmatprep.mubr.msk.f32.mxu1 %vm86_vm1, %v60_v30 }
  0x21   :  { %956 = vmatmul.mubr.msk.f32.gmra.mxu0 %vm86_vm1, %v29_v31  ;;  %1004 = vmatmul.mubr.msk.f32.gmra.mxu1 %vm86_vm1, %v61_v32 }
  0x22   :  { %958 = vmatprep.mubr.msk.f32.mxu0 %vm86_vm1, %v30_v33  ;;  %1006 = vmatprep.mubr.msk.f32.mxu1 %vm86_vm1, %v62_v34 }
  0x25   :  { %959 = vmatmul.mubr.msk.f32.gmra.mxu0 %vm86_vm1, %v31_v35  ;;  %1007 = vmatmul.mubr.msk.f32.gmra.mxu1 %vm86_vm1, %v63_v36 }
  0x26   :  { %961 = vmatprep.mubr.msk.f32.mxu0 %vm86_vm1, %v32_v37  ;;  %1009 = vmatprep.mubr.msk.f32.mxu1 %vm86_vm1, %v64_v38 }
  0x29   :  { %962 = vmatmul.mubr.msk.f32.gmra.mxu0 %vm86_vm1, %v33_v39  ;;  %1010 = vmatmul.mubr.msk.f32.gmra.mxu1 %vm86_vm1, %v65_v40 }
  0x2a   :  { %964 = vmatprep.mubr.msk.f32.mxu0 %vm86_vm1, %v34_v41  ;;  %1012 = vmatprep.mubr.msk.f32.mxu1 %vm86_vm1, %v66_v42 }
  0x2d   :  { %965 = vmatmul.mubr.msk.f32.gmra.mxu0 %vm86_vm1, %v35_v43  ;;  %1013 = vmatmul.mubr.msk.f32.gmra.mxu1 %vm86_vm1, %v67_v44 }
  0x2e   :  { %967 = vmatprep.mubr.msk.f32.mxu0 %vm86_vm1, %v36_v45  ;;  %1015 = vmatprep.mubr.msk.f32.mxu1 %vm86_vm1, %v68_v46 }
  0x31   :  { %968 = vmatmul.mubr.msk.f32.gmra.mxu0 %vm86_vm1, %v37_v47  ;;  %1016 = vmatmul.mubr.msk.f32.gmra.mxu1 %vm86_vm1, %v69_v48 }
  0x32   :  { %970 = vmatprep.mubr.msk.f32.mxu0 %vm86_vm1, %v38_v49  ;;  %1018 = vmatprep.mubr.msk.f32.mxu1 %vm86_vm1, %v70_v50 }
  0x35   :  { %971 = vmatmul.mubr.msk.f32.gmra.mxu0 %vm86_vm1, %v39_v51  ;;  %1019 = vmatmul.mubr.msk.f32.gmra.mxu1 %vm86_vm1, %v71_v52 }
  0x36   :  { %973 = vmatprep.mubr.msk.f32.mxu0 %vm86_vm1, %v40_v53  ;;  %1021 = vmatprep.mubr.msk.f32.mxu1 %vm86_vm1, %v72_v54 }
  0x39   :  { %974 = vmatmul.mubr.msk.f32.gmra.mxu0 %vm86_vm1, %v41_v55  ;;  %1022 = vmatmul.mubr.msk.f32.gmra.mxu1 %vm86_vm1, %v73_v56 }
  0x3a   :  { %976 = vmatprep.mubr.msk.f32.mxu0 %vm86_vm1, %v42_v57  ;;  %1024 = vmatprep.mubr.msk.f32.mxu1 %vm86_vm1, %v74_v58 }
  0x3d   :  { %977 = vmatmul.mubr.msk.f32.gmra.mxu0 %vm86_vm1, %v43_v59  ;;  %1025 = vmatmul.mubr.msk.f32.gmra.mxu1 %vm86_vm1, %v75_v60 }
  0x3e   :  { %979 = vmatprep.mubr.msk.f32.mxu0 %vm86_vm1, %v44_v61  ;;  %1027 = vmatprep.mubr.msk.f32.mxu1 %vm86_vm1, %v76_v62 }
  0x41   :  { %980 = vmatmul.mubr.msk.f32.gmra.mxu0 %vm86_vm1, %v45_v63  ;;  %1028 = vmatmul.mubr.msk.f32.gmra.mxu1 %vm86_vm1, %v77_v0 }
  0xc5   :  { %v936_v2 = vpop.f32.mrf.mxu0  ;;  %v984_v3 = vpop.f32.mrf.mxu1 }
  0xc6   :  { %v355_v4 = vadd.f32 %v936_v2, %v1314_v1  ;;  %v515_v5 = vadd.f32 %v984_v3, %v1314_v1 }
  0xc7   :  { %v349_v6 = vpop.f32.mrf.mxu0  ;;  %v509_v7 = vpop.f32.mrf.mxu1 }
  0xc8   :  { %v669_v8 = vmax.f32 %v355_v4, 0.0  ;;  %v701_v9 = vmax.f32 %v515_v5, 0.0  ;;  %v350_v10 = vadd.f32 %v1314_v1, %v349_v6  ;;  %v510_v11 = vadd.f32 %v1314_v1, %v509_v7 }
  0xc9   :  { %v939_v12 = vpop.f32.mrf.mxu0  ;;  %v987_v13 = vpop.f32.mrf.mxu1 }
  0xca   :  { %734 = vst.msk [vmem:[%s1639_s3 + $0x8] sm:$0xff] %vm732_vm2, %v669_v8  ;;  %766 = vst.msk [vmem:[%s1639_s3 + $0x108] sm:$0xff] %vm732_vm2, %v701_v9  ;;  %v668_v14 = vmax.f32 %v350_v10, 0.0  ;;  %v700_v15 = vmax.f32 %v510_v11, 0.0  ;;  %v365_v16 = vadd.f32 %v939_v12, %v1314_v1  ;;  %v525_v17 = vadd.f32 %v987_v13, %v1314_v1 }
  0xcb   :  { %v359_v18 = vpop.f32.mrf.mxu0  ;;  %v519_v19 = vpop.f32.mrf.mxu1 }
  0xcc   :  { %733 = vst.msk [vmem:[%s1639_s3] sm:$0xff] %vm732_vm2, %v668_v14  ;;  %765 = vst.msk [vmem:[%s1639_s3 + $0x100] sm:$0xff] %vm732_vm2, %v700_v15  ;;  %v671_v20 = vmax.f32 %v365_v16, 0.0  ;;  %v703_v21 = vmax.f32 %v525_v17, 0.0  ;;  %v360_v22 = vadd.f32 %v1314_v1, %v359_v18  ;;  %v520_v23 = vadd.f32 %v1314_v1, %v519_v19 }
  0xcd   :  { %v942_v24 = vpop.f32.mrf.mxu0  ;;  %v990_v25 = vpop.f32.mrf.mxu1 }
  0xce   :  { %736 = vst.msk [vmem:[%s1639_s3 + $0x18] sm:$0xff] %vm732_vm2, %v671_v20  ;;  %768 = vst.msk [vmem:[%s1639_s3 + $0x118] sm:$0xff] %vm732_vm2, %v703_v21  ;;  %v670_v26 = vmax.f32 %v360_v22, 0.0  ;;  %v702_v27 = vmax.f32 %v520_v23, 0.0  ;;  %v375_v28 = vadd.f32 %v942_v24, %v1314_v1  ;;  %v535_v29 = vadd.f32 %v990_v25, %v1314_v1 }
  0xcf   :  { %v369_v30 = vpop.f32.mrf.mxu0  ;;  %v529_v31 = vpop.f32.mrf.mxu1 }
  0xd0   :  { %735 = vst.msk [vmem:[%s1639_s3 + $0x10] sm:$0xff] %vm732_vm2, %v670_v26  ;;  %767 = vst.msk [vmem:[%s1639_s3 + $0x110] sm:$0xff] %vm732_vm2, %v702_v27  ;;  %v673_v32 = vmax.f32 %v375_v28, 0.0  ;;  %v705_v33 = vmax.f32 %v535_v29, 0.0  ;;  %v370_v34 = vadd.f32 %v1314_v1, %v369_v30  ;;  %v530_v35 = vadd.f32 %v1314_v1, %v529_v31 }
  0xd1   :  { %v945_v36 = vpop.f32.mrf.mxu0  ;;  %v993_v37 = vpop.f32.mrf.mxu1 }
  0xd2   :  { %738 = vst.msk [vmem:[%s1639_s3 + $0x28] sm:$0xff] %vm732_vm2, %v673_v32  ;;  %770 = vst.msk [vmem:[%s1639_s3 + $0x128] sm:$0xff] %vm732_vm2, %v705_v33  ;;  %v672_v38 = vmax.f32 %v370_v34, 0.0  ;;  %v704_v39 = vmax.f32 %v530_v35, 0.0  ;;  %v385_v40 = vadd.f32 %v945_v36, %v1314_v1  ;;  %v545_v41 = vadd.f32 %v993_v37, %v1314_v1 }
  0xd3   :  { %v379_v42 = vpop.f32.mrf.mxu0  ;;  %v539_v43 = vpop.f32.mrf.mxu1 }
  0xd4   :  { %737 = vst.msk [vmem:[%s1639_s3 + $0x20] sm:$0xff] %vm732_vm2, %v672_v38  ;;  %769 = vst.msk [vmem:[%s1639_s3 + $0x120] sm:$0xff] %vm732_vm2, %v704_v39  ;;  %v675_v44 = vmax.f32 %v385_v40, 0.0  ;;  %v707_v45 = vmax.f32 %v545_v41, 0.0  ;;  %v380_v46 = vadd.f32 %v1314_v1, %v379_v42  ;;  %v540_v47 = vadd.f32 %v1314_v1, %v539_v43 }
  0xd5   :  { %v948_v48 = vpop.f32.mrf.mxu0  ;;  %v996_v49 = vpop.f32.mrf.mxu1 }
  0xd6   :  { %740 = vst.msk [vmem:[%s1639_s3 + $0x38] sm:$0xff] %vm732_vm2, %v675_v44  ;;  %772 = vst.msk [vmem:[%s1639_s3 + $0x138] sm:$0xff] %vm732_vm2, %v707_v45  ;;  %v674_v50 = vmax.f32 %v380_v46, 0.0  ;;  %v706_v51 = vmax.f32 %v540_v47, 0.0  ;;  %v395_v52 = vadd.f32 %v948_v48, %v1314_v1  ;;  %v555_v53 = vadd.f32 %v996_v49, %v1314_v1 }
  0xd7   :  { %v389_v54 = vpop.f32.mrf.mxu0  ;;  %v549_v55 = vpop.f32.mrf.mxu1 }
  0xd8   :  { %739 = vst.msk [vmem:[%s1639_s3 + $0x30] sm:$0xff] %vm732_vm2, %v674_v50  ;;  %771 = vst.msk [vmem:[%s1639_s3 + $0x130] sm:$0xff] %vm732_vm2, %v706_v51  ;;  %v677_v56 = vmax.f32 %v395_v52, 0.0  ;;  %v709_v57 = vmax.f32 %v555_v53, 0.0  ;;  %v390_v58 = vadd.f32 %v1314_v1, %v389_v54  ;;  %v550_v59 = vadd.f32 %v1314_v1, %v549_v55 }
  0xd9   :  { %v951_v60 = vpop.f32.mrf.mxu0  ;;  %v999_v61 = vpop.f32.mrf.mxu1 }
  0xda   :  { %742 = vst.msk [vmem:[%s1639_s3 + $0x48] sm:$0xff] %vm732_vm2, %v677_v56  ;;  %774 = vst.msk [vmem:[%s1639_s3 + $0x148] sm:$0xff] %vm732_vm2, %v709_v57  ;;  %v676_v62 = vmax.f32 %v390_v58, 0.0  ;;  %v708_v63 = vmax.f32 %v550_v59, 0.0  ;;  %v405_v0 = vadd.f32 %v951_v60, %v1314_v1  ;;  %v565_v2 = vadd.f32 %v999_v61, %v1314_v1 }
  0xdb   :  { %v399_v3 = vpop.f32.mrf.mxu0  ;;  %v559_v4 = vpop.f32.mrf.mxu1 }
  0xdc   :  { %741 = vst.msk [vmem:[%s1639_s3 + $0x40] sm:$0xff] %vm732_vm2, %v676_v62  ;;  %773 = vst.msk [vmem:[%s1639_s3 + $0x140] sm:$0xff] %vm732_vm2, %v708_v63  ;;  %v679_v5 = vmax.f32 %v405_v0, 0.0  ;;  %v711_v6 = vmax.f32 %v565_v2, 0.0  ;;  %v400_v7 = vadd.f32 %v1314_v1, %v399_v3  ;;  %v560_v8 = vadd.f32 %v1314_v1, %v559_v4 }
  0xdd   :  { %v954_v9 = vpop.f32.mrf.mxu0  ;;  %v1002_v10 = vpop.f32.mrf.mxu1 }
  0xde   :  { %744 = vst.msk [vmem:[%s1639_s3 + $0x58] sm:$0xff] %vm732_vm2, %v679_v5  ;;  %776 = vst.msk [vmem:[%s1639_s3 + $0x158] sm:$0xff] %vm732_vm2, %v711_v6  ;;  %v678_v11 = vmax.f32 %v400_v7, 0.0  ;;  %v710_v12 = vmax.f32 %v560_v8, 0.0  ;;  %v415_v13 = vadd.f32 %v954_v9, %v1314_v1  ;;  %v575_v14 = vadd.f32 %v1002_v10, %v1314_v1 }
  0xdf   :  { %v409_v15 = vpop.f32.mrf.mxu0  ;;  %v569_v16 = vpop.f32.mrf.mxu1 }
  0xe0   :  { %743 = vst.msk [vmem:[%s1639_s3 + $0x50] sm:$0xff] %vm732_vm2, %v678_v11  ;;  %775 = vst.msk [vmem:[%s1639_s3 + $0x150] sm:$0xff] %vm732_vm2, %v710_v12  ;;  %v681_v17 = vmax.f32 %v415_v13, 0.0  ;;  %v713_v18 = vmax.f32 %v575_v14, 0.0  ;;  %v410_v19 = vadd.f32 %v1314_v1, %v409_v15  ;;  %v570_v20 = vadd.f32 %v1314_v1, %v569_v16 }
  0xe1   :  { %v957_v21 = vpop.f32.mrf.mxu0  ;;  %v1005_v22 = vpop.f32.mrf.mxu1 }
  0xe2   :  { %746 = vst.msk [vmem:[%s1639_s3 + $0x68] sm:$0xff] %vm732_vm2, %v681_v17  ;;  %778 = vst.msk [vmem:[%s1639_s3 + $0x168] sm:$0xff] %vm732_vm2, %v713_v18  ;;  %v680_v23 = vmax.f32 %v410_v19, 0.0  ;;  %v712_v24 = vmax.f32 %v570_v20, 0.0  ;;  %v425_v25 = vadd.f32 %v957_v21, %v1314_v1  ;;  %v585_v26 = vadd.f32 %v1005_v22, %v1314_v1 }
  0xe3   :  { %v419_v27 = vpop.f32.mrf.mxu0  ;;  %v579_v28 = vpop.f32.mrf.mxu1 }
  0xe4   :  { %745 = vst.msk [vmem:[%s1639_s3 + $0x60] sm:$0xff] %vm732_vm2, %v680_v23  ;;  %777 = vst.msk [vmem:[%s1639_s3 + $0x160] sm:$0xff] %vm732_vm2, %v712_v24  ;;  %v683_v29 = vmax.f32 %v425_v25, 0.0  ;;  %v715_v30 = vmax.f32 %v585_v26, 0.0  ;;  %v420_v31 = vadd.f32 %v1314_v1, %v419_v27  ;;  %v580_v32 = vadd.f32 %v1314_v1, %v579_v28 }
  0xe5   :  { %v960_v33 = vpop.f32.mrf.mxu0  ;;  %v1008_v34 = vpop.f32.mrf.mxu1 }
  0xe6   :  { %748 = vst.msk [vmem:[%s1639_s3 + $0x78] sm:$0xff] %vm732_vm2, %v683_v29  ;;  %780 = vst.msk [vmem:[%s1639_s3 + $0x178] sm:$0xff] %vm732_vm2, %v715_v30  ;;  %v682_v35 = vmax.f32 %v420_v31, 0.0  ;;  %v714_v36 = vmax.f32 %v580_v32, 0.0  ;;  %v435_v37 = vadd.f32 %v960_v33, %v1314_v1  ;;  %v595_v38 = vadd.f32 %v1008_v34, %v1314_v1 }
  0xe7   :  { %v429_v39 = vpop.f32.mrf.mxu0  ;;  %v589_v40 = vpop.f32.mrf.mxu1 }
  0xe8   :  { %747 = vst.msk [vmem:[%s1639_s3 + $0x70] sm:$0xff] %vm732_vm2, %v682_v35  ;;  %779 = vst.msk [vmem:[%s1639_s3 + $0x170] sm:$0xff] %vm732_vm2, %v714_v36  ;;  %v685_v41 = vmax.f32 %v435_v37, 0.0  ;;  %v717_v42 = vmax.f32 %v595_v38, 0.0  ;;  %v430_v43 = vadd.f32 %v1314_v1, %v429_v39  ;;  %v590_v44 = vadd.f32 %v1314_v1, %v589_v40 }
  0xe9   :  { %v963_v45 = vpop.f32.mrf.mxu0  ;;  %v1011_v46 = vpop.f32.mrf.mxu1 }
  0xea   :  { %750 = vst.msk [vmem:[%s1639_s3 + $0x88] sm:$0xff] %vm732_vm2, %v685_v41  ;;  %782 = vst.msk [vmem:[%s1639_s3 + $0x188] sm:$0xff] %vm732_vm2, %v717_v42  ;;  %v684_v47 = vmax.f32 %v430_v43, 0.0  ;;  %v716_v48 = vmax.f32 %v590_v44, 0.0  ;;  %v445_v49 = vadd.f32 %v963_v45, %v1314_v1  ;;  %v605_v50 = vadd.f32 %v1011_v46, %v1314_v1 }
  0xeb   :  { %v439_v51 = vpop.f32.mrf.mxu0  ;;  %v599_v52 = vpop.f32.mrf.mxu1 }
  0xec   :  { %749 = vst.msk [vmem:[%s1639_s3 + $0x80] sm:$0xff] %vm732_vm2, %v684_v47  ;;  %781 = vst.msk [vmem:[%s1639_s3 + $0x180] sm:$0xff] %vm732_vm2, %v716_v48  ;;  %v687_v53 = vmax.f32 %v445_v49, 0.0  ;;  %v719_v54 = vmax.f32 %v605_v50, 0.0  ;;  %v440_v55 = vadd.f32 %v1314_v1, %v439_v51  ;;  %v600_v56 = vadd.f32 %v1314_v1, %v599_v52 }
  0xed   :  { %v966_v57 = vpop.f32.mrf.mxu0  ;;  %v1014_v58 = vpop.f32.mrf.mxu1 }
  0xee   :  { %752 = vst.msk [vmem:[%s1639_s3 + $0x98] sm:$0xff] %vm732_vm2, %v687_v53  ;;  %784 = vst.msk [vmem:[%s1639_s3 + $0x198] sm:$0xff] %vm732_vm2, %v719_v54  ;;  %v686_v59 = vmax.f32 %v440_v55, 0.0  ;;  %v718_v60 = vmax.f32 %v600_v56, 0.0  ;;  %v455_v61 = vadd.f32 %v966_v57, %v1314_v1  ;;  %v615_v62 = vadd.f32 %v1014_v58, %v1314_v1 }
  0xef   :  { %v449_v63 = vpop.f32.mrf.mxu0  ;;  %v609_v0 = vpop.f32.mrf.mxu1 }
  0xf0   :  { %751 = vst.msk [vmem:[%s1639_s3 + $0x90] sm:$0xff] %vm732_vm2, %v686_v59  ;;  %783 = vst.msk [vmem:[%s1639_s3 + $0x190] sm:$0xff] %vm732_vm2, %v718_v60  ;;  %v689_v2 = vmax.f32 %v455_v61, 0.0  ;;  %v721_v3 = vmax.f32 %v615_v62, 0.0  ;;  %v450_v4 = vadd.f32 %v1314_v1, %v449_v63  ;;  %v610_v5 = vadd.f32 %v1314_v1, %v609_v0 }
  0xf1   :  { %v969_v6 = vpop.f32.mrf.mxu0  ;;  %v1017_v7 = vpop.f32.mrf.mxu1 }
  0xf2   :  { %754 = vst.msk [vmem:[%s1639_s3 + $0xa8] sm:$0xff] %vm732_vm2, %v689_v2  ;;  %786 = vst.msk [vmem:[%s1639_s3 + $0x1a8] sm:$0xff] %vm732_vm2, %v721_v3  ;;  %v688_v8 = vmax.f32 %v450_v4, 0.0  ;;  %v720_v9 = vmax.f32 %v610_v5, 0.0  ;;  %v465_v10 = vadd.f32 %v969_v6, %v1314_v1  ;;  %v625_v11 = vadd.f32 %v1017_v7, %v1314_v1 }
  0xf3   :  { %v459_v12 = vpop.f32.mrf.mxu0  ;;  %v619_v13 = vpop.f32.mrf.mxu1 }
  0xf4   :  { %753 = vst.msk [vmem:[%s1639_s3 + $0xa0] sm:$0xff] %vm732_vm2, %v688_v8  ;;  %785 = vst.msk [vmem:[%s1639_s3 + $0x1a0] sm:$0xff] %vm732_vm2, %v720_v9  ;;  %v691_v14 = vmax.f32 %v465_v10, 0.0  ;;  %v723_v15 = vmax.f32 %v625_v11, 0.0  ;;  %v460_v16 = vadd.f32 %v1314_v1, %v459_v12  ;;  %v620_v17 = vadd.f32 %v1314_v1, %v619_v13 }
  0xf5   :  { %v972_v18 = vpop.f32.mrf.mxu0  ;;  %v1020_v19 = vpop.f32.mrf.mxu1 }
  0xf6   :  { %756 = vst.msk [vmem:[%s1639_s3 + $0xb8] sm:$0xff] %vm732_vm2, %v691_v14  ;;  %788 = vst.msk [vmem:[%s1639_s3 + $0x1b8] sm:$0xff] %vm732_vm2, %v723_v15  ;;  %v690_v20 = vmax.f32 %v460_v16, 0.0  ;;  %v722_v21 = vmax.f32 %v620_v17, 0.0  ;;  %v475_v22 = vadd.f32 %v972_v18, %v1314_v1  ;;  %v635_v23 = vadd.f32 %v1020_v19, %v1314_v1 }
  0xf7   :  { %v469_v24 = vpop.f32.mrf.mxu0  ;;  %v629_v25 = vpop.f32.mrf.mxu1 }
  0xf8   :  { %755 = vst.msk [vmem:[%s1639_s3 + $0xb0] sm:$0xff] %vm732_vm2, %v690_v20  ;;  %787 = vst.msk [vmem:[%s1639_s3 + $0x1b0] sm:$0xff] %vm732_vm2, %v722_v21  ;;  %v693_v26 = vmax.f32 %v475_v22, 0.0  ;;  %v725_v27 = vmax.f32 %v635_v23, 0.0  ;;  %v470_v28 = vadd.f32 %v1314_v1, %v469_v24  ;;  %v630_v29 = vadd.f32 %v1314_v1, %v629_v25 }
  0xf9   :  { %v975_v30 = vpop.f32.mrf.mxu0  ;;  %v1023_v31 = vpop.f32.mrf.mxu1 }
  0xfa   :  { %758 = vst.msk [vmem:[%s1639_s3 + $0xc8] sm:$0xff] %vm732_vm2, %v693_v26  ;;  %790 = vst.msk [vmem:[%s1639_s3 + $0x1c8] sm:$0xff] %vm732_vm2, %v725_v27  ;;  %v692_v32 = vmax.f32 %v470_v28, 0.0  ;;  %v724_v33 = vmax.f32 %v630_v29, 0.0  ;;  %v485_v34 = vadd.f32 %v975_v30, %v1314_v1  ;;  %v645_v35 = vadd.f32 %v1023_v31, %v1314_v1 }
  0xfb   :  { %v479_v36 = vpop.f32.mrf.mxu0  ;;  %v639_v37 = vpop.f32.mrf.mxu1 }
  0xfc   :  { %757 = vst.msk [vmem:[%s1639_s3 + $0xc0] sm:$0xff] %vm732_vm2, %v692_v32  ;;  %789 = vst.msk [vmem:[%s1639_s3 + $0x1c0] sm:$0xff] %vm732_vm2, %v724_v33  ;;  %v695_v38 = vmax.f32 %v485_v34, 0.0  ;;  %v727_v39 = vmax.f32 %v645_v35, 0.0  ;;  %v480_v40 = vadd.f32 %v1314_v1, %v479_v36  ;;  %v640_v41 = vadd.f32 %v1314_v1, %v639_v37 }
  0xfd   :  { %v978_v42 = vpop.f32.mrf.mxu0  ;;  %v1026_v43 = vpop.f32.mrf.mxu1 }
  0xfe   :  { %760 = vst.msk [vmem:[%s1639_s3 + $0xd8] sm:$0xff] %vm732_vm2, %v695_v38  ;;  %792 = vst.msk [vmem:[%s1639_s3 + $0x1d8] sm:$0xff] %vm732_vm2, %v727_v39  ;;  %v694_v44 = vmax.f32 %v480_v40, 0.0  ;;  %v726_v45 = vmax.f32 %v640_v41, 0.0  ;;  %v495_v46 = vadd.f32 %v978_v42, %v1314_v1  ;;  %v655_v47 = vadd.f32 %v1026_v43, %v1314_v1 }
  0xff   :  { %v489_v48 = vpop.f32.mrf.mxu0  ;;  %v649_v49 = vpop.f32.mrf.mxu1 }
 0x100   :  { %759 = vst.msk [vmem:[%s1639_s3 + $0xd0] sm:$0xff] %vm732_vm2, %v694_v44  ;;  %791 = vst.msk [vmem:[%s1639_s3 + $0x1d0] sm:$0xff] %vm732_vm2, %v726_v45  ;;  %v697_v50 = vmax.f32 %v495_v46, 0.0  ;;  %v729_v51 = vmax.f32 %v655_v47, 0.0  ;;  %v490_v52 = vadd.f32 %v1314_v1, %v489_v48  ;;  %v650_v53 = vadd.f32 %v1314_v1, %v649_v49 }
 0x101   :  { %v981_v54 = vpop.f32.mrf.mxu0  ;;  %v1029_v55 = vpop.f32.mrf.mxu1 }
 0x102   :  { %762 = vst.msk [vmem:[%s1639_s3 + $0xe8] sm:$0xff] %vm732_vm2, %v697_v50  ;;  %794 = vst.msk [vmem:[%s1639_s3 + $0x1e8] sm:$0xff] %vm732_vm2, %v729_v51  ;;  %v696_v56 = vmax.f32 %v490_v52, 0.0  ;;  %v728_v57 = vmax.f32 %v650_v53, 0.0  ;;  %v505_v58 = vadd.f32 %v981_v54, %v1314_v1  ;;  %v665_v59 = vadd.f32 %v1029_v55, %v1314_v1 }
 0x103   :  { %v499_v60 = vpop.f32.mrf.mxu0  ;;  %v659_v61 = vpop.f32.mrf.mxu1 }
 0x104   :  { %761 = vst.msk [vmem:[%s1639_s3 + $0xe0] sm:$0xff] %vm732_vm2, %v696_v56  ;;  %793 = vst.msk [vmem:[%s1639_s3 + $0x1e0] sm:$0xff] %vm732_vm2, %v728_v57  ;;  %v699_v62 = vmax.f32 %v505_v58, 0.0  ;;  %v731_v63 = vmax.f32 %v665_v59, 0.0  ;;  %v500_v0 = vadd.f32 %v1314_v1, %v499_v60  ;;  %v660_v2 = vadd.f32 %v1314_v1, %v659_v61 }
 0x106   :  { %764 = vst.msk [vmem:[%s1639_s3 + $0xf8] sm:$0xff] %vm732_vm2, %v699_v62  ;;  %796 = vst.msk [vmem:[%s1639_s3 + $0x1f8] sm:$0xff] %vm732_vm2, %v731_v63  ;;  %v698_v3 = vmax.f32 %v500_v0, 0.0  ;;  %v730_v4 = vmax.f32 %v660_v2, 0.0 }
 0x108   :  { %763 = vst.msk [vmem:[%s1639_s3 + $0xf0] sm:$0xff] %vm732_vm2, %v698_v3  ;;  %795 = vst.msk [vmem:[%s1639_s3 + $0x1f0] sm:$0xff] %vm732_vm2, %v730_v4 }

</bundles_post_ra>
